<compile_context>
chip_gen: v6e
topology: v6e:2x2x1
jax: 0.10.0
libtpu: 0.0.40
codegen_flags: <defaults>
</compile_context>

<pallas_src>
import functools

import jax
import jax.numpy as jnp
from jax.experimental import pallas as pl
from jax.experimental.pallas import tpu as pltpu


# ---------------- config (mirrors the PyTorch cfg) ----------------
BATCH = 2
SEQ = 8
D_RESIDUAL = 32
LN_EPS = 1e-5


def layernorm_kernel(x_ref, w_ref, b_ref, o_ref, *, eps, inv_d):
    # x_ref: (TR, D) row tile -- rows on sublanes, d_residual on lanes.
    x = x_ref[...]
    # Two independent XLU reduces (overlap) instead of a serial two-pass chain.
    sum_x = jnp.sum(x, axis=-1, keepdims=True)
    sum_x2 = jnp.sum(x * x, axis=-1, keepdims=True)
    mu = sum_x * inv_d
    # One-pass (biased) variance: E[x^2] - mu^2.  See numerical note at top.
    var = sum_x2 * inv_d - mu * mu
    inv_scale = jax.lax.rsqrt(var + eps)  # EUP rsqrt; overlaps the centering below.
    o_ref[...] = (x - mu) * inv_scale * w_ref[...] + b_ref[...]


def _pick_row_tile(num_rows, target_rows):
    """Largest multiple-of-8 divisor of num_rows that is <= target_rows.

    Falls back to the full row count (single grid step) when no such divisor
    exists -- in that case block_shape == array shape, which is always legal.
    """
    if num_rows <= target_rows:
        return num_rows
    best = num_rows
    for tr in range(target_rows, 7, -8):
        if num_rows % tr == 0:
            best = tr
            break
    return best


def layer_norm(x, w, b, *, eps=LN_EPS, target_rows_per_tile=512):
    """LayerNorm over the last dim of x: (B, S, D) -> (B, S, D)."""
    B, S, D = x.shape
    R = B * S
    # Flatten batch*position into one row axis; at the toy size this makes the
    # whole problem one (16, 32) tile / one grid step.
    x2 = x.reshape(R, D)
    w2 = w.reshape(1, D)
    b2 = b.reshape(1, D)

    # Row tile sized so scaled-up shapes stay well inside v7x's 64 MiB VMEM
    # (double-buffered in + out ~ 4 * TR * D * 4 B); toy case -> TR = R, grid=(1,).
    tr = _pick_row_tile(R, target_rows_per_tile)
    grid = (R // tr,)

    kernel = functools.partial(layernorm_kernel, eps=eps, inv_d=1.0 / D)
    out2 = pl.pallas_call(
        kernel,
        out_shape=jax.ShapeDtypeStruct((R, D), x.dtype),
        grid=grid,
        in_specs=[
            # Row tile marches with the grid index.
            pl.BlockSpec((tr, D), lambda i: (i, 0)),
            # w/b: constant block index -> stay VMEM-resident across grid steps.
            pl.BlockSpec((1, D), lambda i: (0, 0)),
            pl.BlockSpec((1, D), lambda i: (0, 0)),
        ],
        out_specs=pl.BlockSpec((tr, D), lambda i: (i, 0)),
        # Rows are independent: let v7x's two TensorCores split the row grid.
        # Measured-neutral on v5e/v6e (1 TC).
        compiler_params=pltpu.CompilerParams(dimension_semantics=("parallel",)),
    )(x2, w2, b2)
    return out2.reshape(B, S, D)


# ---------------- pure-JAX reference (mirrors the PyTorch forward) ----------------
def layer_norm_ref(x, w, b, eps=LN_EPS):
    xc = x - x.mean(-1, keepdims=True)
    scale = jnp.sqrt((xc ** 2).mean(-1, keepdims=True) + eps)
    return xc / scale * w + b


if __name__ == "__main__":
    k1, k2, k3 = jax.random.split(jax.random.PRNGKey(0), 3)
    x = jax.random.normal(k1, (BATCH, SEQ, D_RESIDUAL), jnp.float32)
    # Module initializes w=ones, b=zeros; use perturbed values so the affine
    # part of the forward pass is actually exercised.
    w = 1.0 + 0.02 * jax.random.normal(k2, (D_RESIDUAL,), jnp.float32)
    b = 0.02 * jax.random.normal(k3, (D_RESIDUAL,), jnp.float32)

    out = layer_norm(x, w, b)
    out = jax.block_until_ready(out)

    ref = layer_norm_ref(x, w, b)
    assert out.shape == (BATCH, SEQ, D_RESIDUAL)
    assert jnp.allclose(out, ref, atol=1e-4, rtol=1e-4), "mismatch vs JAX reference"
    print("KERNEL_OK")
</pallas_src>

<mosaic_0001>
module attributes {stable_mosaic.version = 11 : i64} {
  func.func @layernorm_kernel(%arg0: i32, %arg1: memref<16x32xf32, #tpu.memory_space<vmem>>, %arg2: memref<1x32xf32, #tpu.memory_space<vmem>>, %arg3: memref<1x32xf32, #tpu.memory_space<vmem>>, %arg4: memref<16x32xf32, #tpu.memory_space<vmem>>) attributes {dimension_semantics = [#tpu.dimension_semantics<parallel>], iteration_bounds = array<i64: 1>, scalar_prefetch = 0 : i64, scratch_operands = 0 : i64, tpu.core_type = #tpu.core_type<tc>, window_params = [{transform_indices = @transform_0, window_bounds = array<i64: 16, 32>}, {pipeline_mode = #tpu.pipeline_mode<synchronous>, transform_indices = @transform_1, window_bounds = array<i64: 1, 32>}, {pipeline_mode = #tpu.pipeline_mode<synchronous>, transform_indices = @transform_2, window_bounds = array<i64: 1, 32>}, {transform_indices = @transform_3, window_bounds = array<i64: 16, 32>}]} {
    %c0 = arith.constant 0 : index
    %c0_0 = arith.constant 0 : index
    %0 = vector.load %arg1[%c0, %c0_0] : memref<16x32xf32, #tpu.memory_space<vmem>>, vector<16x32xf32>
    %cst = arith.constant dense<0.000000e+00> : vector<16xf32>
    %1 = vector.multi_reduction <add>, %0, %cst [1] : vector<16x32xf32> to vector<16xf32>
    %2 = vector.shape_cast %1 : vector<16xf32> to vector<16x1xf32>
    %3 = arith.mulf %0, %0 : vector<16x32xf32>
    %cst_1 = arith.constant dense<0.000000e+00> : vector<16xf32>
    %4 = vector.multi_reduction <add>, %3, %cst_1 [1] : vector<16x32xf32> to vector<16xf32>
    %5 = vector.shape_cast %4 : vector<16xf32> to vector<16x1xf32>
    %cst_2 = arith.constant 3.125000e-02 : f32
    %6 = vector.broadcast %cst_2 : f32 to vector<16x1xf32>
    %7 = arith.mulf %2, %6 : vector<16x1xf32>
    %cst_3 = arith.constant 3.125000e-02 : f32
    %8 = vector.broadcast %cst_3 : f32 to vector<16x1xf32>
    %9 = arith.mulf %5, %8 : vector<16x1xf32>
    %10 = arith.mulf %7, %7 : vector<16x1xf32>
    %11 = arith.subf %9, %10 : vector<16x1xf32>
    %cst_4 = arith.constant 9.99999974E-6 : f32
    %12 = vector.broadcast %cst_4 : f32 to vector<16x1xf32>
    %13 = arith.addf %11, %12 : vector<16x1xf32>
    %14 = math.rsqrt %13 : vector<16x1xf32>
    %15 = vector.broadcast %7 : vector<16x1xf32> to vector<16x32xf32>
    %16 = arith.subf %0, %15 : vector<16x32xf32>
    %17 = vector.broadcast %14 : vector<16x1xf32> to vector<16x32xf32>
    %18 = arith.mulf %16, %17 : vector<16x32xf32>
    %c0_5 = arith.constant 0 : index
    %c0_6 = arith.constant 0 : index
    %19 = vector.load %arg2[%c0_5, %c0_6] : memref<1x32xf32, #tpu.memory_space<vmem>>, vector<1x32xf32>
    %20 = vector.broadcast %19 : vector<1x32xf32> to vector<16x32xf32>
    %21 = arith.mulf %18, %20 : vector<16x32xf32>
    %c0_7 = arith.constant 0 : index
    %c0_8 = arith.constant 0 : index
    %22 = vector.load %arg3[%c0_7, %c0_8] : memref<1x32xf32, #tpu.memory_space<vmem>>, vector<1x32xf32>
    %23 = vector.broadcast %22 : vector<1x32xf32> to vector<16x32xf32>
    %24 = arith.addf %21, %23 : vector<16x32xf32>
    %c0_9 = arith.constant 0 : index
    %c0_10 = arith.constant 0 : index
    %25 = vector.load %arg4[%c0_9, %c0_10] : memref<16x32xf32, #tpu.memory_space<vmem>>, vector<16x32xf32>
    tpu.vector_store %arg4[%c0_9, %c0_10], %24 {strides = array<i32>} : memref<16x32xf32, #tpu.memory_space<vmem>>, vector<16x32xf32>,
    return
  }
  func.func @transform_0(%arg0: i32) -> (i32, i32) {
    %c0_i32 = arith.constant 0 : i32
    %c0_i32_0 = arith.constant 0 : i32
    return %arg0, %c0_i32 : i32, i32
  }
  func.func @transform_1(%arg0: i32) -> (i32, i32) {
    %c0_i32 = arith.constant 0 : i32
    %c0_i32_0 = arith.constant 0 : i32
    %c0_i32_1 = arith.constant 0 : i32
    return %c0_i32, %c0_i32_0 : i32, i32
  }
  func.func @transform_2(%arg0: i32) -> (i32, i32) {
    %c0_i32 = arith.constant 0 : i32
    %c0_i32_0 = arith.constant 0 : i32
    %c0_i32_1 = arith.constant 0 : i32
    return %c0_i32, %c0_i32_0 : i32, i32
  }
  func.func @transform_3(%arg0: i32) -> (i32, i32) {
    %c0_i32 = arith.constant 0 : i32
    %c0_i32_0 = arith.constant 0 : i32
    return %arg0, %c0_i32 : i32, i32
  }
}

</mosaic_0001>

<bundles_post_ra>
// kernel: tpu_custom_call.1
= control target key start
LH: loop header
LB: loop body
LE: loop exit
PB: predicated region body
PF: predicated region fallthrough
CT: control target
= control target key end

     0   :  { %8 = vsyncpa [#allocation3], 0  ;;  %s201_s0 = inlined_call_operand.hbm [shape: f32[16,32], index: 0, kind: input, shape index: {}]   ;;  %s202_s1 = inlined_call_operand.vmem [shape: f32[1,32], index: 1, kind: input, shape index: {}]   ;;  %s203_s2 = inlined_call_operand.vmem [shape: f32[1,32], index: 2, kind: input, shape index: {}]   ;;  %s204_s3 = inlined_call_operand.hbm [shape: f32[16,32], index: 3, kind: output, shape index: {}]  }
   0x1   :  { %9 = vsyncpa [#allocation4], 0  ;;  %s153_s12 = smov [#allocation2]  }
   0x2   :  { %s15_s13 = sshll.u32 %s153_s12, 4  ;;  %s16_s13 = int_to_ptr.vmem [resolvable:$true] %s15_s13 }
   0x3   :  { %s117_s14 = scalar_lea.vmem %s16_s13, 256  ;;  %p122_p1 = scmp.lt.s32.totalorder %s16_s13, %s16_s13 }
   0x4   :  { %p118_p0 = scmp.ne.s32.totalorder %s16_s13, %s117_s14  ;;  %p123_p2 = scmp.lt.s32.totalorder %s117_s14, %s117_s14 }
   0x6   :  { %p124_p3 = por %p123_p2, %p122_p1 }
   0x8   :  { %p125_p4 = pnand %p124_p3, %p118_p0 }
   0xa   :  { %128 = shalt.err (!%p125_p4)
}
   0xb   :  { %s154_s15 = smov 128   ;;  %s155_s16 = smov 8  }
   0xc   :  { %21 = dma.hbm_to_vmem [thread:$0]  %s201_s0, 256, %s16_s13, [#allocation3], %s154_s15, %s154_s15, %s155_s16  }
   0xd   :  { %149 = dma.done.wait [#allocation3], 256  }
   0xe   :  { %150 = vsyncadd [#allocation3], 4294967040  ;;  %vm31_vm0 = vcmask 261120   ;;  %v29_v0 = vld [vmem:[#allocation2] sm:$0xff]  ;;  %v30_v1 = vld [vmem:[#allocation2 + $0x8] sm:$0xff]  ;;  %s156_s22 = smov [#allocation5]  }
   0xf   :  { %v32_v2 = vsel %vm31_vm0, %v29_v0, 0.0  ;;  %v38_v3 = vmul.f32 %v29_v0, %v29_v0  ;;  %v39_v4 = vmul.f32 %v30_v1, %v30_v1  ;;  %v35_v6 = vsel %vm31_vm0, %v30_v1, 0.0  ;;  %v99_v24 = vld [vmem:[%s202_s1] ss:$0 sm:$0xff]  ;;  %s87_s23 = sshll.u32 %s156_s22, 4  ;;  %s88_s23 = int_to_ptr.vmem [resolvable:$true] %s87_s23 }
  0x10   :  { %33 = vadd.xlane.f32.xlu0 %v32_v2  ;;  %v100_v26 = vld [vmem:[%s203_s2] ss:$0 sm:$0xff]  ;;  %s129_s1 = scalar_lea.vmem %s88_s23, 256  ;;  %p134_p6 = scmp.lt.s32.totalorder %s88_s23, %s88_s23 }
  0x11   :  { %v40_v5 = vsel %vm31_vm0, %v38_v3, 0.0  ;;  %v43_v7 = vsel %vm31_vm0, %v39_v4, 0.0  ;;  %p130_p5 = scmp.ne.s32.totalorder %s88_s23, %s129_s1  ;;  %p135_p7 = scmp.lt.s32.totalorder %s129_s1, %s129_s1 }
  0x12   :  { %41 = vadd.xlane.f32.xlu1 %v40_v5 }
  0x13   :  { %p136_p8 = por %p135_p7, %p134_p6 }
  0x14   :  { %36 = vadd.xlane.f32.xlu0 %v35_v6 }
  0x15   :  { %p137_p9 = pnand %p136_p8, %p130_p5 }
  0x16   :  { %44 = vadd.xlane.f32.xlu1 %v43_v7 }
  0x99   :  { %v34_v8 = vpop.xlane.xlu0 %33 }
  0x9a   :  { %v46_v9 = vmul.f32 0.03125, %v34_v8 }
  0x9b   :  { %v42_v10 = vpop.xlane.xlu1 %41 }
  0x9c   :  { %v50_v11 = vmul.f32 %v46_v9, %v46_v9  ;;  %v48_v12 = vmul.f32 0.03125, %v42_v10  ;;  %v58_v22 = vsub.f32 %v29_v0, %v46_v9 }
  0x9d   :  { %v37_v13 = vpop.xlane.xlu0 %36 }
  0x9e   :  { %v52_v14 = vsub.f32 %v48_v12, %v50_v11  ;;  %v47_v15 = vmul.f32 0.03125, %v37_v13 }
  0x9f   :  { %v45_v16 = vpop.xlane.xlu1 %44 }
  0xa0   :  { %v54_v17 = vadd.f32 1e-05, %v52_v14  ;;  %v51_v18 = vmul.f32 %v47_v15, %v47_v15  ;;  %v49_v19 = vmul.f32 0.03125, %v45_v16  ;;  %v59_v27 = vsub.f32 %v30_v1, %v47_v15 }
  0xa2   :  { %105 = vrsqrt.f32 %v54_v17  ;;  %v53_v20 = vsub.f32 %v49_v19, %v51_v18 }
  0xa4   :  { %v55_v21 = vadd.f32 1e-05, %v53_v20 }
  0xa6   :  { %107 = vrsqrt.f32 %v55_v21 }
  0xaf   :  { %v106_v23 = vpop.eup %105 }
  0xb0   :  { %v60_v25 = vmul.f32 %v106_v23, %v58_v22 }
  0xb2   :  { %v69_v28 = vmul.f32 %v99_v24, %v60_v25 }
  0xb3   :  { %v108_v29 = vpop.eup %107 }
  0xb4   :  { %v61_v30 = vmul.f32 %v108_v29, %v59_v27  ;;  %v78_v31 = vadd.f32 %v100_v26, %v69_v28 }
  0xb6   :  { %v70_v32 = vmul.f32 %v99_v24, %v61_v30  ;;  %80 = vst.msk [vmem:[#allocation5] sm:$0xff] %vm31_vm0, %v78_v31 }
  0xb8   :  { %v79_v33 = vadd.f32 %v100_v26, %v70_v32 }
  0xba   :  { %81 = vst.msk [vmem:[#allocation5 + $0x8] sm:$0xff] %vm31_vm0, %v79_v33 }
  0xbb   :  { %140 = shalt.err (!%p137_p9)
}
  0xbc   :  { %93 = dma.vmem_to_hbm [thread:$0]  %s88_s23, 256, %s204_s3, [#allocation4], %s154_s15, %s154_s15, %s155_s16  }
  0xbd   :  { %151 = dma.done.wait [#allocation4], 256  }
  0xbe   :  { %152 = vsyncadd [#allocation4], 4294967040 }
  0xbf   :  { %97 = vsyncpa [#allocation3], 1 }
  0xc0   :  { %98 = vsyncpa [#allocation4], 1 }

</bundles_post_ra>
